<compile_context>
chip_gen: v7x
topology: tpu7x:2x2x1
jax: 0.10.0
libtpu: 0.0.40
codegen_flags: <defaults>
</compile_context>

<pallas_src>
import jax
import jax.numpy as jnp
from jax.experimental import pallas as pl
from jax.experimental.pallas import tpu as pltpu


def _make_kernel(n_t: int, t_major: bool, fused: bool, split_phases: bool):
    """Build the kernel body.

    Refs:
      w_ref    : (C, 3C) prestacked [W_k0 | W_k1 | W_k2] if fused, else (3, C, C)
      b_ref    : (C, 1)        f32 bias, resident
      halo_ref : (B*n_t, C, 1) resident left-halo columns x[:, :, 2*t*T - 1] (0 for t==0)
      x refs   : one (1, C, 2T) raw slab (primary) or two (1, C, T) phase tiles (fallback)
      o_ref    : (1, C, T)
    """

    def body(w_ref, b_ref, halo_ref, xe, xo, o_ref):
        b = pl.program_id(1 if t_major else 0)
        t = pl.program_id(0 if t_major else 1)

        # Tap k=0 operand x[2j-1]: right-shift the odd phase by one lane (XLU roll is
        # nearly free in this MXU/HBM-bound kernel); lane 0 comes from the resident halo.
        left = halo_ref[b * n_t + t]                                    # (C, 1)
        lane0 = jax.lax.broadcasted_iota(jnp.int32, xo.shape, 1) == 0
        x_k0 = jnp.where(lane0, left, pltpu.roll(xo, shift=1, axis=1))  # (C, T)

        if fused:
            # Single MXU dot with K = 3C against the prestacked (C, 3C) weight.
            xin = jnp.concatenate([x_k0, xe, xo], axis=0)               # (3C, T)
            acc = jnp.dot(w_ref[...], xin, preferred_element_type=jnp.float32)
        else:
            acc = jnp.dot(w_ref[1], xe, preferred_element_type=jnp.float32)
            acc = acc + jnp.dot(w_ref[2], xo, preferred_element_type=jnp.float32)
            acc = acc + jnp.dot(w_ref[0], x_k0, preferred_element_type=jnp.float32)

        # Bias added once on the final f32 accumulator, single lane-dense store.
        o_ref[0] = (acc + b_ref[...]).astype(o_ref.dtype)

    if split_phases:
        def kernel(w_ref, b_ref, halo_ref, xe_ref, xo_ref, o_ref):
            body(w_ref, b_ref, halo_ref, xe_ref[0], xo_ref[0], o_ref)
    else:
        def kernel(w_ref, b_ref, halo_ref, x_ref, o_ref):
            t_lanes = x_ref.shape[2] // 2
            xe = x_ref[0, :, pl.ds(0, t_lanes, stride=2)]   # x[2j]   -> tap k=1
            xo = x_ref[0, :, pl.ds(1, t_lanes, stride=2)]   # x[2j+1] -> tap k=2
            body(w_ref, b_ref, halo_ref, xe, xo, o_ref)
    return kernel


def _pick_tile_l(C, B, L_out, itemsize, vmem_limit_bytes):
    """Largest legal output-tile width whose working set fits comfortably in scoped VMEM.

    Counts the double-buffered streaming slabs (input is 2T wide), the resident weights,
    bias and halo (x2: Pallas double-buffers even constant-index blocks), and in-kernel
    f32 temporaries.  Full-extent tiles are used when they fit (always legal block shapes);
    otherwise a multiple of 128 lanes.
    """
    sub = 8 * (4 // itemsize)                        # sublanes per tile: f32 8, bf16 16
    c_pad = -(-C // sub) * sub
    fixed = 2 * (3 * C * c_pad * itemsize            # resident weights (either layout)
                 + c_pad * 4                         # bias (f32)
                 + B * int(pl.cdiv(L_out, 128)) * c_pad * itemsize)   # halo columns
    budget = int(0.75 * vmem_limit_bytes) - fixed
    per_col = c_pad * (12 * itemsize + 8)            # 2x (2T in + T out) buffers + temps
    t = budget // per_col if per_col > 0 else 0
    t = min(t, 2048)                                 # HBM roofline flat beyond ~1-2K lanes
    if L_out <= 128 or t >= L_out:
        return L_out
    return max(128, (t // 128) * 128)


def downsample1d(x, weight, bias, *, tile_l=None, fuse_taps=None,
                 vmem_limit_bytes=32 * 1024 * 1024):
    """x: (B, C, L); weight: (C, C, 3); bias: (C,).
    Returns (B, C, L_out) matching torch.nn.Conv1d(C, C, kernel_size=3, stride=2, padding=1)."""
    B, C, L = x.shape
    K, S, P = 3, 2, 1
    L_out = (L + 2 * P - K) // S + 1
    dtype = x.dtype
    itemsize = jnp.dtype(dtype).itemsize

    # Odd L only: the last k=2 tap reads the implicit right zero-pad; pad one column so
    # every input block is exact and all block shapes stay legal.  Even L: no copy at all.
    Lp = 2 * L_out
    x_p = x if L == Lp else jnp.pad(x, ((0, 0), (0, 0), (0, Lp - L)))

    if tile_l is None:
        T = _pick_tile_l(C, B, L_out, itemsize, vmem_limit_bytes)
    else:
        T = min(int(tile_l), L_out)
        if T != L_out and T % 128 != 0:
            raise ValueError("tile_l must be a multiple of 128 or cover the full output")
    n_t = int(pl.cdiv(L_out, T))

    # One left-halo column per tile: x[:, :, 2*t*T - 1] (zeros for tile 0).  Tiny and
    # VMEM-resident, so there is no per-step micro-DMA and no cross-step carried state.
    starts = jnp.arange(n_t) * (2 * T) - 1
    halo = jnp.take(x_p, jnp.clip(starts, 0, Lp - 1), axis=2)            # (B, C, n_t)
    halo = jnp.where((starts >= 0)[None, None, :], halo, jnp.zeros_like(halo))
    halo = jnp.transpose(halo, (0, 2, 1)).reshape(B * n_t, C, 1).astype(dtype)

    sub = 8 * (4 // itemsize)
    fused = (C < 128 and C % sub == 0) if fuse_taps is None else bool(fuse_taps)
    if fused:
        # (C, 3C) = [W_k0 | W_k1 | W_k2]; one K=3C MXU dot per tile in the kernel.
        w = jnp.concatenate([weight[:, :, 0], weight[:, :, 1], weight[:, :, 2]],
                            axis=1).astype(dtype)
        w_spec = pl.BlockSpec((C, 3 * C), lambda *_: (0, 0))
    else:
        w = jnp.transpose(weight, (2, 0, 1)).astype(dtype)               # (3, C, C)
        w_spec = pl.BlockSpec((3, C, C), lambda *_: (0, 0, 0))
    b2 = bias.astype(jnp.float32).reshape(C, 1)

    # Both grid axes are independent ("parallel"); lead with the larger one so megacore
    # sharding on v7x has work for both TensorCores.
    t_major = n_t >= B
    if t_major:
        grid = (n_t, B)
        bt_map = lambda t, b: (b, 0, t)
    else:
        grid = (B, n_t)
        bt_map = lambda b, t: (b, 0, t)

    flops = 2 * B * C * C * K * L_out
    bytes_accessed = ((x_p.size + B * C * L_out + w.size + halo.size) * itemsize
                      + b2.size * 4)

    def _run(kernel, x_specs, x_args):
        return pl.pallas_call(
            kernel,
            out_shape=jax.ShapeDtypeStruct((B, C, L_out), dtype),
            grid=grid,
            in_specs=[
                w_spec,                                               # weights, resident
                pl.BlockSpec((C, 1), lambda *_: (0, 0)),              # bias, resident
                pl.BlockSpec((B * n_t, C, 1), lambda *_: (0, 0, 0)),  # halo, resident
                *x_specs,
            ],
            out_specs=pl.BlockSpec((1, C, T), bt_map),
            compiler_params=pltpu.CompilerParams(
                dimension_semantics=("parallel", "parallel"),
                vmem_limit_bytes=vmem_limit_bytes,
            ),
            cost_estimate=pl.CostEstimate(
                flops=flops, transcendentals=0, bytes_accessed=bytes_accessed),
        )(w, b2, halo, *x_args)

    try:
        # Primary path: stream raw (1, C, 2T) slabs of x and deinterleave in-kernel.
        out = _run(_make_kernel(n_t, t_major, fused, split_phases=False),
                   [pl.BlockSpec((1, C, 2 * T), bt_map)], [x_p])
    except Exception:
        # Fallback for Mosaic builds without lane-strided loads: split the phases in the
        # wrapper (one extra HBM round trip); the kernel body is otherwise identical.
        xe = x_p[:, :, 0::2]
        xo = x_p[:, :, 1::2]
        out = _run(_make_kernel(n_t, t_major, fused, split_phases=True),
                   [pl.BlockSpec((1, C, T), bt_map), pl.BlockSpec((1, C, T), bt_map)],
                   [xe, xo])
    return out


def _reference_conv1d(x, weight, bias):
    # Pure-JAX reference (same semantics as torch.nn.Conv1d(dim, dim, 3, 2, 1)).
    out = jax.lax.conv_general_dilated(
        x, weight, window_strides=(2,), padding=((1, 1),),
        dimension_numbers=("NCH", "OIH", "NCH"))
    return out + bias.reshape(1, -1, 1)


def _make_params(key, C):
    kw, kb = jax.random.split(key)
    bound = 1.0 / ((C * 3) ** 0.5)
    weight = jax.random.uniform(kw, (C, C, 3), jnp.float32, -bound, bound)
    bias = jax.random.uniform(kb, (C,), jnp.float32, -bound, bound)
    return weight, bias


def _check(key, B, C, L, **kwargs):
    kx, kp = jax.random.split(key)
    x = jax.random.normal(kx, (B, C, L), dtype=jnp.float32)
    weight, bias = _make_params(kp, C)
    y = jax.block_until_ready(downsample1d(x, weight, bias, **kwargs))
    y_ref = _reference_conv1d(x, weight, bias)
    L_out = (L + 2 - 3) // 2 + 1
    assert y.shape == (B, C, L_out), y.shape
    err = float(jnp.max(jnp.abs(y - y_ref)))
    assert jnp.allclose(y, y_ref, atol=1e-4, rtol=1e-4), (
        f"mismatch vs reference conv for shape {(B, C, L)}: max abs err {err}")
    return y


if __name__ == "__main__":
    key = jax.random.PRNGKey(0)
    k0, k1, k2, k3 = jax.random.split(key, 4)

    # Primary small example consistent with the module: batch=2, dim=4, length=16.
    _check(k0, B=2, C=4, L=16)

    # Odd non-divisible length with forced multi-tile L_out: exercises the odd-L pad,
    # left-halo columns, partial edge blocks, and the fused K=3C dot path.
    _check(k1, B=2, C=8, L=517, tile_l=128)
    # Even length, several exact tiles, t-major grid ordering, fused path.
    _check(k2, B=2, C=16, L=768, tile_l=128)
    # Larger channel count: exercises the unfused 3-dot path and resident (3, C, C) weights.
    _check(k3, B=1, C=128, L=256)

    print("KERNEL_OK")
</pallas_src>

<mosaic_0001>
module attributes {stable_mosaic.version = 11 : i64} {
  func.func @kernel(%arg0: i32, %arg1: i32, %arg2: memref<3x4x4xf32, #tpu.memory_space<vmem>>, %arg3: memref<4x1xf32, #tpu.memory_space<vmem>>, %arg4: memref<2x4x1xf32, #tpu.memory_space<vmem>>, %arg5: memref<1x4x16xf32, #tpu.memory_space<vmem>>, %arg6: memref<1x4x8xf32, #tpu.memory_space<vmem>>) attributes {dimension_semantics = [#tpu.dimension_semantics<parallel>, #tpu.dimension_semantics<parallel>], iteration_bounds = array<i64: 2, 1>, scalar_prefetch = 0 : i64, scratch_operands = 0 : i64, tpu.core_type = #tpu.core_type<tc>, window_params = [{pipeline_mode = #tpu.pipeline_mode<synchronous>, transform_indices = @transform_0, window_bounds = array<i64: 3, 4, 4>}, {pipeline_mode = #tpu.pipeline_mode<synchronous>, transform_indices = @transform_1, window_bounds = array<i64: 4, 1>}, {pipeline_mode = #tpu.pipeline_mode<synchronous>, transform_indices = @transform_2, window_bounds = array<i64: 2, 4, 1>}, {transform_indices = @transform_3, window_bounds = array<i64: 1, 4, 16>}, {transform_indices = @transform_4, window_bounds = array<i64: 1, 4, 8>}]} {
    %c0 = arith.constant 0 : index
    %c0_0 = arith.constant 0 : index
    %c0_1 = arith.constant 0 : index
    %0 = tpu.strided_load %arg5[%c0, %c0_0, %c0_1] {strides = array<i32: 1, 1, 2>} : memref<1x4x16xf32, #tpu.memory_space<vmem>>, vector<1x4x8xf32>
    %1 = vector.shape_cast %0 : vector<1x4x8xf32> to vector<4x8xf32>
    %c0_2 = arith.constant 0 : index
    %c0_3 = arith.constant 0 : index
    %c1 = arith.constant 1 : index
    %2 = tpu.strided_load %arg5[%c0_2, %c0_3, %c1] {strides = array<i32: 1, 1, 2>} : memref<1x4x16xf32, #tpu.memory_space<vmem>>, vector<1x4x8xf32>
    %3 = vector.shape_cast %2 : vector<1x4x8xf32> to vector<4x8xf32>
    %c1_i32 = arith.constant 1 : i32
    %4 = arith.muli %arg0, %c1_i32 : i32
    %5 = arith.addi %4, %arg1 : i32
    %6 = arith.index_cast %5 : i32 to index
    %c0_4 = arith.constant 0 : index
    %c0_5 = arith.constant 0 : index
    %7 = vector.load %arg4[%6, %c0_4, %c0_5] : memref<2x4x1xf32, #tpu.memory_space<vmem>>, vector<1x4x1xf32>
    %8 = vector.shape_cast %7 : vector<1x4x1xf32> to vector<4x1xf32>
    %9 = tpu.iota {dimensions = array<i32: 1>} : vector<4x8xi32>
    %c0_i32 = arith.constant 0 : i32
    %10 = vector.broadcast %c0_i32 : i32 to vector<4x8xi32>
    %11 = arith.cmpi eq, %9, %10 : vector<4x8xi32>
    %c1_i32_6 = arith.constant 1 : i32
    %12 = tpu.dynamic_rotate %3 by %c1_i32_6 dim 1 : vector<4x8xf32>, i32 -> vector<4x8xf32>
    %13 = vector.shape_cast %8 : vector<4x1xf32> to vector<4x1xf32>
    %14 = vector.broadcast %13 : vector<4x1xf32> to vector<4x8xf32>
    %15 = arith.select %11, %14, %12 : vector<4x8xi1>, vector<4x8xf32>
    %c1_7 = arith.constant 1 : index
    %c0_8 = arith.constant 0 : index
    %c0_9 = arith.constant 0 : index
    %16 = vector.load %arg2[%c1_7, %c0_8, %c0_9] : memref<3x4x4xf32, #tpu.memory_space<vmem>>, vector<1x4x4xf32>
    %17 = vector.shape_cast %16 : vector<1x4x4xf32> to vector<4x4xf32>
    %cst = arith.constant dense<0.000000e+00> : vector<4x8xf32>
    %18 = tpu.matmul %17, %1, %cst {dimension_numbers = #tpu.dot_dimension_numbers<[1], [0], [0], [1], [0, 0, 1, 1], [], []>} : vector<4x4xf32>, vector<4x8xf32>, vector<4x8xf32> -> vector<4x8xf32>
    %c2 = arith.constant 2 : index
    %c0_10 = arith.constant 0 : index
    %c0_11 = arith.constant 0 : index
    %19 = vector.load %arg2[%c2, %c0_10, %c0_11] : memref<3x4x4xf32, #tpu.memory_space<vmem>>, vector<1x4x4xf32>
    %20 = vector.shape_cast %19 : vector<1x4x4xf32> to vector<4x4xf32>
    %cst_12 = arith.constant dense<0.000000e+00> : vector<4x8xf32>
    %21 = tpu.matmul %20, %3, %cst_12 {dimension_numbers = #tpu.dot_dimension_numbers<[1], [0], [0], [1], [0, 0, 1, 1], [], []>} : vector<4x4xf32>, vector<4x8xf32>, vector<4x8xf32> -> vector<4x8xf32>
    %22 = arith.addf %18, %21 : vector<4x8xf32>
    %c0_13 = arith.constant 0 : index
    %c0_14 = arith.constant 0 : index
    %c0_15 = arith.constant 0 : index
    %23 = vector.load %arg2[%c0_13, %c0_14, %c0_15] : memref<3x4x4xf32, #tpu.memory_space<vmem>>, vector<1x4x4xf32>
    %24 = vector.shape_cast %23 : vector<1x4x4xf32> to vector<4x4xf32>
    %cst_16 = arith.constant dense<0.000000e+00> : vector<4x8xf32>
    %25 = tpu.matmul %24, %15, %cst_16 {dimension_numbers = #tpu.dot_dimension_numbers<[1], [0], [0], [1], [0, 0, 1, 1], [], []>} : vector<4x4xf32>, vector<4x8xf32>, vector<4x8xf32> -> vector<4x8xf32>
    %26 = arith.addf %22, %25 : vector<4x8xf32>
    %c0_17 = arith.constant 0 : index
    %c0_18 = arith.constant 0 : index
    %27 = vector.load %arg3[%c0_17, %c0_18] : memref<4x1xf32, #tpu.memory_space<vmem>>, vector<4x1xf32>
    %28 = vector.broadcast %27 : vector<4x1xf32> to vector<4x8xf32>
    %29 = arith.addf %26, %28 : vector<4x8xf32>
    %c0_19 = arith.constant 0 : index
    %c0_20 = arith.constant 0 : index
    %c0_21 = arith.constant 0 : index
    %30 = vector.load %arg6[%c0_19, %c0_20, %c0_21] : memref<1x4x8xf32, #tpu.memory_space<vmem>>, vector<1x4x8xf32>
    %31 = vector.shape_cast %30 : vector<1x4x8xf32> to vector<4x8xf32>
    %32 = vector.shape_cast %29 : vector<4x8xf32> to vector<1x4x8xf32>
    tpu.vector_store %arg6[%c0_19, %c0_20, %c0_21], %32 {strides = array<i32>} : memref<1x4x8xf32, #tpu.memory_space<vmem>>, vector<1x4x8xf32>,
    return
  }
  func.func @transform_0(%arg0: i32, %arg1: i32) -> (i32, i32, i32) {
    %c0_i32 = arith.constant 0 : i32
    %c0_i32_0 = arith.constant 0 : i32
    %c0_i32_1 = arith.constant 0 : i32
    %c0_i32_2 = arith.constant 0 : i32
    return %c0_i32, %c0_i32_0, %c0_i32_1 : i32, i32, i32
  }
  func.func @transform_1(%arg0: i32, %arg1: i32) -> (i32, i32) {
    %c0_i32 = arith.constant 0 : i32
    %c0_i32_0 = arith.constant 0 : i32
    %c0_i32_1 = arith.constant 0 : i32
    return %c0_i32, %c0_i32_0 : i32, i32
  }
  func.func @transform_2(%arg0: i32, %arg1: i32) -> (i32, i32, i32) {
    %c0_i32 = arith.constant 0 : i32
    %c0_i32_0 = arith.constant 0 : i32
    %c0_i32_1 = arith.constant 0 : i32
    %c0_i32_2 = arith.constant 0 : i32
    return %c0_i32, %c0_i32_0, %c0_i32_1 : i32, i32, i32
  }
  func.func @transform_3(%arg0: i32, %arg1: i32) -> (i32, i32, i32) {
    %c0_i32 = arith.constant 0 : i32
    %c0_i32_0 = arith.constant 0 : i32
    return %arg0, %c0_i32, %arg1 : i32, i32, i32
  }
  func.func @transform_4(%arg0: i32, %arg1: i32) -> (i32, i32, i32) {
    %c0_i32 = arith.constant 0 : i32
    %c0_i32_0 = arith.constant 0 : i32
    return %arg0, %c0_i32, %arg1 : i32, i32, i32
  }
}

module attributes {stable_mosaic.version = 11 : i64} {
  func.func @kernel(%arg0: i32, %arg1: i32, %arg2: memref<3x4x4xf32, #tpu.memory_space<vmem>>, %arg3: memref<4x1xf32, #tpu.memory_space<vmem>>, %arg4: memref<2x4x1xf32, #tpu.memory_space<vmem>>, %arg5: memref<1x4x8xf32, #tpu.memory_space<vmem>>, %arg6: memref<1x4x8xf32, #tpu.memory_space<vmem>>, %arg7: memref<1x4x8xf32, #tpu.memory_space<vmem>>) attributes {dimension_semantics = [#tpu.dimension_semantics<parallel>, #tpu.dimension_semantics<parallel>], iteration_bounds = array<i64: 2, 1>, scalar_prefetch = 0 : i64, scratch_operands = 0 : i64, tpu.core_type = #tpu.core_type<tc>, window_params = [{pipeline_mode = #tpu.pipeline_mode<synchronous>, transform_indices = @transform_0, window_bounds = array<i64: 3, 4, 4>}, {pipeline_mode = #tpu.pipeline_mode<synchronous>, transform_indices = @transform_1, window_bounds = array<i64: 4, 1>}, {pipeline_mode = #tpu.pipeline_mode<synchronous>, transform_indices = @transform_2, window_bounds = array<i64: 2, 4, 1>}, {transform_indices = @transform_3, window_bounds = array<i64: 1, 4, 8>}, {transform_indices = @transform_4, window_bounds = array<i64: 1, 4, 8>}, {transform_indices = @transform_5, window_bounds = array<i64: 1, 4, 8>}]} {
    %c0 = arith.constant 0 : index
    %c0_0 = arith.constant 0 : index
    %c0_1 = arith.constant 0 : index
    %0 = vector.load %arg5[%c0, %c0_0, %c0_1] : memref<1x4x8xf32, #tpu.memory_space<vmem>>, vector<1x4x8xf32>
    %1 = vector.shape_cast %0 : vector<1x4x8xf32> to vector<4x8xf32>
    %c0_2 = arith.constant 0 : index
    %c0_3 = arith.constant 0 : index
    %c0_4 = arith.constant 0 : index
    %2 = vector.load %arg6[%c0_2, %c0_3, %c0_4] : memref<1x4x8xf32, #tpu.memory_space<vmem>>, vector<1x4x8xf32>
    %3 = vector.shape_cast %2 : vector<1x4x8xf32> to vector<4x8xf32>
    %c1_i32 = arith.constant 1 : i32
    %4 = arith.muli %arg0, %c1_i32 : i32
    %5 = arith.addi %4, %arg1 : i32
    %6 = arith.index_cast %5 : i32 to index
    %c0_5 = arith.constant 0 : index
    %c0_6 = arith.constant 0 : index
    %7 = vector.load %arg4[%6, %c0_5, %c0_6] : memref<2x4x1xf32, #tpu.memory_space<vmem>>, vector<1x4x1xf32>
    %8 = vector.shape_cast %7 : vector<1x4x1xf32> to vector<4x1xf32>
    %9 = tpu.iota {dimensions = array<i32: 1>} : vector<4x8xi32>
    %c0_i32 = arith.constant 0 : i32
    %10 = vector.broadcast %c0_i32 : i32 to vector<4x8xi32>
    %11 = arith.cmpi eq, %9, %10 : vector<4x8xi32>
    %c1_i32_7 = arith.constant 1 : i32
    %12 = tpu.dynamic_rotate %3 by %c1_i32_7 dim 1 : vector<4x8xf32>, i32 -> vector<4x8xf32>
    %13 = vector.shape_cast %8 : vector<4x1xf32> to vector<4x1xf32>
    %14 = vector.broadcast %13 : vector<4x1xf32> to vector<4x8xf32>
    %15 = arith.select %11, %14, %12 : vector<4x8xi1>, vector<4x8xf32>
    %c1 = arith.constant 1 : index
    %c0_8 = arith.constant 0 : index
    %c0_9 = arith.constant 0 : index
    %16 = vector.load %arg2[%c1, %c0_8, %c0_9] : memref<3x4x4xf32, #tpu.memory_space<vmem>>, vector<1x4x4xf32>
    %17 = vector.shape_cast %16 : vector<1x4x4xf32> to vector<4x4xf32>
    %cst = arith.constant dense<0.000000e+00> : vector<4x8xf32>
    %18 = tpu.matmul %17, %1, %cst {dimension_numbers = #tpu.dot_dimension_numbers<[1], [0], [0], [1], [0, 0, 1, 1], [], []>} : vector<4x4xf32>, vector<4x8xf32>, vector<4x8xf32> -> vector<4x8xf32>
    %c2 = arith.constant 2 : index
    %c0_10 = arith.constant 0 : index
    %c0_11 = arith.constant 0 : index
    %19 = vector.load %arg2[%c2, %c0_10, %c0_11] : memref<3x4x4xf32, #tpu.memory_space<vmem>>, vector<1x4x4xf32>
    %20 = vector.shape_cast %19 : vector<1x4x4xf32> to vector<4x4xf32>
    %cst_12 = arith.constant dense<0.000000e+00> : vector<4x8xf32>
    %21 = tpu.matmul %20, %3, %cst_12 {dimension_numbers = #tpu.dot_dimension_numbers<[1], [0], [0], [1], [0, 0, 1, 1], [], []>} : vector<4x4xf32>, vector<4x8xf32>, vector<4x8xf32> -> vector<4x8xf32>
    %22 = arith.addf %18, %21 : vector<4x8xf32>
    %c0_13 = arith.constant 0 : index
    %c0_14 = arith.constant 0 : index
    %c0_15 = arith.constant 0 : index
    %23 = vector.load %arg2[%c0_13, %c0_14, %c0_15] : memref<3x4x4xf32, #tpu.memory_space<vmem>>, vector<1x4x4xf32>
    %24 = vector.shape_cast %23 : vector<1x4x4xf32> to vector<4x4xf32>
    %cst_16 = arith.constant dense<0.000000e+00> : vector<4x8xf32>
    %25 = tpu.matmul %24, %15, %cst_16 {dimension_numbers = #tpu.dot_dimension_numbers<[1], [0], [0], [1], [0, 0, 1, 1], [], []>} : vector<4x4xf32>, vector<4x8xf32>, vector<4x8xf32> -> vector<4x8xf32>
    %26 = arith.addf %22, %25 : vector<4x8xf32>
    %c0_17 = arith.constant 0 : index
    %c0_18 = arith.constant 0 : index
    %27 = vector.load %arg3[%c0_17, %c0_18] : memref<4x1xf32, #tpu.memory_space<vmem>>, vector<4x1xf32>
    %28 = vector.broadcast %27 : vector<4x1xf32> to vector<4x8xf32>
    %29 = arith.addf %26, %28 : vector<4x8xf32>
    %c0_19 = arith.constant 0 : index
    %c0_20 = arith.constant 0 : index
    %c0_21 = arith.constant 0 : index
    %30 = vector.load %arg7[%c0_19, %c0_20, %c0_21] : memref<1x4x8xf32, #tpu.memory_space<vmem>>, vector<1x4x8xf32>
    %31 = vector.shape_cast %30 : vector<1x4x8xf32> to vector<4x8xf32>
    %32 = vector.shape_cast %29 : vector<4x8xf32> to vector<1x4x8xf32>
    tpu.vector_store %arg7[%c0_19, %c0_20, %c0_21], %32 {strides = array<i32>} : memref<1x4x8xf32, #tpu.memory_space<vmem>>, vector<1x4x8xf32>,
    return
  }
  func.func @transform_0(%arg0: i32, %arg1: i32) -> (i32, i32, i32) {
    %c0_i32 = arith.constant 0 : i32
    %c0_i32_0 = arith.constant 0 : i32
    %c0_i32_1 = arith.constant 0 : i32
    %c0_i32_2 = arith.constant 0 : i32
    return %c0_i32, %c0_i32_0, %c0_i32_1 : i32, i32, i32
  }
  func.func @transform_1(%arg0: i32, %arg1: i32) -> (i32, i32) {
    %c0_i32 = arith.constant 0 : i32
    %c0_i32_0 = arith.constant 0 : i32
    %c0_i32_1 = arith.constant 0 : i32
    return %c0_i32, %c0_i32_0 : i32, i32
  }
  func.func @transform_2(%arg0: i32, %arg1: i32) -> (i32, i32, i32) {
    %c0_i32 = arith.constant 0 : i32
    %c0_i32_0 = arith.constant 0 : i32
    %c0_i32_1 = arith.constant 0 : i32
    %c0_i32_2 = arith.constant 0 : i32
    return %c0_i32, %c0_i32_0, %c0_i32_1 : i32, i32, i32
  }
  func.func @transform_3(%arg0: i32, %arg1: i32) -> (i32, i32, i32) {
    %c0_i32 = arith.constant 0 : i32
    %c0_i32_0 = arith.constant 0 : i32
    return %arg0, %c0_i32, %arg1 : i32, i32, i32
  }
  func.func @transform_4(%arg0: i32, %arg1: i32) -> (i32, i32, i32) {
    %c0_i32 = arith.constant 0 : i32
    %c0_i32_0 = arith.constant 0 : i32
    return %arg0, %c0_i32, %arg1 : i32, i32, i32
  }
  func.func @transform_5(%arg0: i32, %arg1: i32) -> (i32, i32, i32) {
    %c0_i32 = arith.constant 0 : i32
    %c0_i32_0 = arith.constant 0 : i32
    return %arg0, %c0_i32, %arg1 : i32, i32, i32
  }
}

</mosaic_0001>

<bundles_post_ra>
// kernel: tpu_custom_call.1
= control target key start
LH: loop header
LB: loop body
LE: loop exit
PB: predicated region body
PF: predicated region fallthrough
CT: control target
= control target key end

     0   :  { %10 = vsyncpa [#allocation3], 0  ;;  %s1010_s0 = inlined_call_operand.vmem [shape: f32[3,4,4], index: 0, kind: input, shape index: {}]   ;;  %s1011_s1 = inlined_call_operand.vmem [shape: f32[4,1], index: 1, kind: input, shape index: {}]   ;;  %s1012_s2 = inlined_call_operand.vmem [shape: f32[2,4,1], index: 2, kind: input, shape index: {}]   ;;  %s1013_s3 = inlined_call_operand.vmem [shape: f32[2,4,8], index: 3, kind: input, shape index: {}]   ;;  %s1014_s4 = inlined_call_operand.vmem [shape: f32[2,4,8], index: 4, kind: input, shape index: {}]   ;;  %s1015_s5 = inlined_call_operand.hbm [shape: f32[2,4,8], index: 5, kind: output, shape index: {}]  }
   0x1   :  { %12 = vsyncpa [#allocation3 + $0x1], 0  ;;  %s868_s18 = smov 0   ;;  %s870_s19 = smov 0  }
   0x2   :  { %s872_s20 = smov 0   ;;  %s874_s21 = smov 0  }
   0x3   :  { %s876_s22 = smov 0   ;;  %s878_s23 = smov 0  }
   0x4 LB: > { %s648_s24 = sadd.s32 4294967295, %s830_s23   ;;  %s649_s25 = sadd.s32 4294967294, %s830_s23   ;;  %s830_s23 = sphi %s878_s23, %s18_s23   ;;  %s826_s22 = sphi %s876_s22, %s1022_s22   ;;  %s822_s21 = sphi %s874_s21, %s1021_s21   ;;  %s818_s20 = sphi %s872_s20, %s1020_s20   ;;  %s814_s19 = sphi %s870_s19, %s1019_s19   ;;  %s810_s18 = sphi %s868_s18, %s1018_s18  }
   0x5   : > { %s30_s26 = sadd.s32 1, %s826_s22  ;;  %s158_s27 = sadd.s32 1, %s818_s20 }
   0x6   : > { %p32_p0 = scmp.ge.s32.totalorder %s30_s26, 2  ;;  %p168_p1 = scmp.ne.s32.totalorder %s818_s20, %s814_s19 }
   0x7   : > { %p169_p2 = scmp.eq.s32.totalorder %s648_s24, 1  ;;  %p174_p3 = scmp.ne.s32.totalorder %s814_s19, %s810_s18 }
   0x8   : > { %s1024_s26 = smov (%p32_p0, %s30_s26), 0  ;;  %p175_p5 = scmp.eq.s32.totalorder %s649_s25, 1 }
   0x9   : > { %p908_p4 = por %p169_p2, %p168_p1  ;;  %s153_s29 = ssub.s32 %s826_s22, %s1024_s26 }
   0xa   : > { %p652_p6 = scmp.ge.s32.totalorder %s830_s23, 1  ;;  %p156_p7 = scmp.eq.s32.totalorder %s153_s29, 0 }
   0xb   : > { %p915_p8 = por %p175_p5, %p174_p3  ;;  %p222_p9 = scmp.lt.s32.totalorder %s830_s23, 3 }
   0xc   : > { %s921_s6 = scalar_select %p156_p7, %s818_s20, %s158_s27  }
   0xd   : > { %p223_p10 = pnand %p652_p6, %p222_p9 }
   0xe   : > { %p259_p11 = scmp.lt.s32.totalorder (!%p223_p10), %s822_s21, 1  ;;  %v832_v0 = vmov (!%p223_p10), 0   ;;  %s656_s7 = sshll.u32 (!%p223_p10), %s822_s21, 2  ;;  %vm307_vm0 = vcmask (!%p223_p10), 1043456   ;;  %v834_v3 = vmov (!%p223_p10), 0.0   ;;  %vm835_vm1 = vmmov (!%p223_p10), 0  }
   0xf   : > { %226 = sbr.rel (%p223_p10) target bundleno = 606 (0x25e), region = 40  ;;  %750 = vset.pattern.permute.xlu1 (!%p223_p10), %v832_v0  ;;  %751 = vset.pattern.permute.xlu0 (!%p223_p10), %v832_v0  ;;  %s277_s11 = scalar_lea.vmem (!%p223_p10), %s1012_s2, %s656_s7  ;;  %vm282_vm2 = vcmask (!%p223_p10), 1047616   ;;  %v658_v6 = vld [vmem:[%s1010_s0 + $0x8] sm:$0xf] (!%p223_p10)  ;;  %vm303_vm3 = vcmask (!%p223_p10), 31744   ;;  %v279_v12 = vlaneseq (!%p223_p10)  ;;  %vm542_vm5 = vcmask (!%p223_p10), 60416  }
  0x10   : > { %v278_v1 = vld [vmem:[%s277_s11] sm:$0xf] (!%p223_p10)  ;;  %s833_s16 = smov (!%p223_p10), 8   ;;  %675 = vmatprep.subr.mxu0 (!%p223_p10), %v834_v3  ;;  %677 = vmatprep.mubr.msk.f32.mxu0 (!%p223_p10), %vm835_vm1, %v834_v3  ;;  %v657_v8 = vld [vmem:[%s1010_s0 + $0x4] sm:$0xf] (!%p223_p10)  ;;  %s836_s11 = smov (!%p223_p10), 121  }
  0x11   : > { %291 = vperm.xlu1 (!%p223_p10), %750, %v278_v1   ;;  %680 = vmatprep.subr.mxu1 (!%p223_p10), %v834_v3  ;;  %v535_v9 = vld [vmem:[%s1011_s1] sm:$0xf] (!%p223_p10)  ;;  %v280_v14 = vand.u32 (!%p223_p10), 127, %v279_v12  ;;  %s256_s14 = sand.u32 (!%p223_p10), 1, %s814_s19  }
  0x12   : > { %682 = vmatprep.mubr.msk.f32.mxu1 (!%p223_p10), %vm835_vm1, %v834_v3  ;;  %v457_v16 = vld [vmem:[%s1010_s0] sm:$0xf] (!%p223_p10)  ;;  %s545_s7 = scalar_lea.sflag (!%p223_p10), [#allocation3], %s256_s14 }
  0x13   : > { %vm281_vm4 = vcmp.eq.s32.totalorder (!%p223_p10), %v280_v14, 0 }
  0x16   : > { %s260_s8 = scalar_select %p259_p11, %s822_s21, 1 }
  0x18   : > { %s654_s12 = sshll.u32 %s260_s8, 2 }
  0x19   : > { %s272_s15 = scalar_lea.vmem %s1014_s4, %s654_s12  ;;  %s265_s25 = scalar_lea.vmem %s1013_s3, %s654_s12 }
  0x1a   : > { %v274_v2 = vld [vmem:[%s272_s15] sm:$0xf]  ;;  %s653_s15 = sshll.u32 %s256_s14, 2 }
  0x1b   : > { %283 = vrot.lane.b32.xlu0 %v274_v2, %s833_s16  ;;  %676 = vmatpush3.msk.msra.mxu0 %vm307_vm0, %v274_v2  ;;  %v273_v7 = vld [vmem:[%s265_s25] sm:$0xf]  ;;  %s258_s17 = scalar_lea.vmem [#allocation2], %s653_s15 }
  0x1c   : > { %685 = vmatprep.subr.mxu0 %v834_v3  ;;  %678 = vmatmul.mubr.msk.f32.vlgmr.msra.gmra.mrb[0].mxu0 %vm303_vm3, %v658_v6  ;;  %s559_s24 = sshll.u32 %s258_s17, 4  ;;  %s965_s24 = int_to_ptr.vmem [resolvable:$true] %s559_s24 }
  0x1d   : > { %681 = vmatpush3.msk.msra.mxu1 %vm307_vm0, %v273_v7  ;;  %687 = vmatprep.mubr.msk.f32.mxu0 %vm835_vm1, %v834_v3  ;;  %s752_s8 = scalar_lea.vmem %s965_s24, 64 }
  0x1e   : > { %683 = vmatmul.mubr.msk.f32.vlgmr.msra.gmra.mrb[0].mxu1 %vm303_vm3, %v657_v8  ;;  %p753_p12 = scmp.ne.s32.totalorder %s965_s24, %s752_s8 }
  0x20   : > { %p754_p13 = pnand %p753_p12, %p908_p4 }
  0x22   : > { %p755_p0 = pneg %p754_p13 }
  0x8d   : > { %v284_v4 = vpop.permute.xlu0 %283 }
  0x8e   : > { %v285_v5 = vsel %vm282_vm2, %v284_v4, %v274_v2 }
  0x8f   : > { %286 = vrot.lane.b32.xlu0 %v285_v5, %s833_s16  ;;  %s666_s16 = sshll.u32 %s822_s21, 6  ;;  %s837_s21 = smov [#allocation2]  }
  0x90   : > { %v292_v13 = vpop.permute.xlu1 %291  ;;  %s963_s29 = scalar_lea.hbm %s1015_s5, %s666_s16  ;;  %s756_s9 = sshll.u32 %s837_s21, 4  ;;  %s757_s9 = int_to_ptr.vmem [resolvable:$false] %s756_s9 }
  0x91   : > { %s758_s10 = scalar_lea.vmem %s757_s9, 128  ;;  %p759_p1 = scmp.lt.s32.totalorder %s965_s24, %s757_s9 }
  0x92   : > { %p760_p2 = scmp.lt.s32.totalorder %s758_s10, %s752_s8 }
  0x93   : > { %538 = vperm.xlu0 %751, %v535_v9  }
  0x94   : > { %p761_p3 = por %p760_p2, %p759_p1 }
  0x96   : > { %p762_p5 = pnand %p761_p3, %p755_p0 }
  0xef   : > { %v377_v18 = vpop.f32.mrb[0].mxu0 }
  0xf0   : > { %v679_v19 = vpop.f32.mrb[1].mxu0 }
  0xf1   : > { %v453_v20 = vpop.f32.mrb[0].mxu1 }
  0xf2   : > { %v454_v21 = vadd.f32 %v453_v20, %v377_v18  ;;  %v684_v22 = vpop.f32.mrb[1].mxu1 }
 0x101   : > { %v287_v10 = vpop.permute.xlu0 %286 }
 0x102   : > { %v288_v11 = vsel %vm282_vm2, %v287_v10, %v274_v2 }
 0x103   : > { %295 = vrot.lane.b32.xlu1 %v288_v11, %s836_s11 }
 0x112   : > { %v539_v24 = vpop.permute.xlu0 %538 }
 0x175   : > { %v296_v15 = vpop.permute.xlu1 %295 }
 0x176   : > { %v298_v17 = vsel %vm281_vm4, %v292_v13, %v296_v15 }
 0x177   : > { %686 = vmatpush3.msk.msra.mxu0 %vm307_vm0, %v298_v17 }
 0x178   : > { %688 = vmatmul.mubr.msk.f32.vlgmr.msra.gmra.mrb[2].mxu0 %vm303_vm3, %v457_v16 }
 0x24b   : > { %v530_v23 = vpop.f32.mrb[2].mxu0 }
 0x24c   : > { %v534_v25 = vadd.f32 %v530_v23, %v454_v21  ;;  %v689_v26 = vpop.f32.mrb[3].mxu0 }
 0x24e   : > { %v541_v27 = vadd.f32 %v539_v24, %v534_v25 }
 0x250   : > { %543 = vst.msk [vmem:[%s258_s17] sm:$0xf] %vm542_vm5, %v541_v27 }
 0x251   : > { %765 = shalt.err (!%p762_p5)
}
 0x252   : > { %s766_s11 = scalar_lea.hbm %s963_s29, 64  ;;  %s770_s14 = scalar_lea.hbm %s1015_s5, 128 }
 0x253   : > { %p767_p6 = scmp.ne.s32.totalorder %s963_s29, %s766_s11  ;;  %p771_p10 = scmp.lt.u32.totalorder %s963_s29, %s1015_s5 }
 0x254   : > { %p772_p11 = scmp.lt.u32.totalorder %s770_s14, %s766_s11  ;;  %p774_p13 = scmp.lt.u32.totalorder %s766_s11, %s963_s29 }
 0x255   : > { %p768_p7 = pnand %p767_p6, %p908_p4 }
 0x256   : > { %p773_p12 = por %p772_p11, %p771_p10 }
 0x257   : > { %p769_p9 = pneg %p768_p7 }
 0x258   : > { %p775_p0 = por %p774_p13, %p773_p12 }
 0x25a   : > { %p776_p1 = pnand %p775_p0, %p769_p9 }
 0x25c   : > { %779 = shalt.err (!%p776_p1)
}
 0x25d   : > { %690 = dma.vmem_to_hbm [thread:$0]  (%p908_p4), %s965_s24, 64, %s963_s29, %s545_s7  }
 0x25e PF: > { %p696_p2 = scmp.ge.s32.totalorder %s830_s23, 2  ;;  %s571_s17 = sand.u32 1, %s810_s18  }
 0x25f   : > { %s572_s25 = scalar_lea.sflag [#allocation3], %s571_s17 }
 0x260   : > { %p693_p3 = pnand %p696_p2, %p915_p8 }
 0x262   : > { %805 = dma.done.wait (!%p693_p3), %s572_s25, 64  }
 0x263   : > { %807 = vsyncadd (!%p693_p3), %s572_s25, 4294967232  ;;  %s18_s23 = sadd.s32 1, %s830_s23   ;;  %s1018_s18 = smov %s814_s19 }
 0x264   : > { %p15_p5 = scmp.ge.s32.totalorder %s18_s23, 4   ;;  %s1019_s19 = smov %s818_s20 }
 0x265   : > { %s1020_s20 = smov %s921_s6  ;;  %s1021_s21 = smov %s826_s22 }
 0x266   : > { %s1022_s22 = smov %s1024_s26  ;;  %17 = sbr.rel (!%p15_p5) target bundleno = 4 (0x4), region = 81 }
 0x26d   :  { %577 = vsyncpa [#allocation3], 1 }
 0x26e   :  { %579 = vsyncpa [#allocation3 + $0x1], 1 }

</bundles_post_ra>
